<compile_context>
chip_gen: v6e
topology: v6e:2x2x1
jax: 0.10.0
libtpu: 0.0.40
codegen_flags: <defaults>
</compile_context>

<pallas_src>
import math

import jax
import jax.numpy as jnp
from jax.experimental import pallas as pl
from jax.experimental.pallas import tpu as pltpu

NR_ROTATIONS = 16
C_FEAT = 32          # feat_extractor output channels (synthetic 3x3 conv + ReLU)
K_PAD = 16           # 9 conv taps + 1 bias tap, zero-padded to a sublane multiple
VMEM_LIMIT = 32 * 1024 * 1024   # safe on v5e / v6e / v7x


# ----------------------------------------------------------------------------
# Pallas kernel 1: conv3x3 (1 -> C) + bias + ReLU + channel mean, both streams fused
#   p_ref : [1, S, K, TN]  im2col patches (bias tap included), lane-dense spatial tile
#   w_ref : [C, K]         weights with bias in column 9
#   o_ref : [1, 1, TN]     channel-mean map for this (batch, lane-tile)
# ----------------------------------------------------------------------------
def _conv_mean_kernel(p_ref, w_ref, o_ref):
    w = w_ref[...]                         # [C, K]
    c = w.shape[0]
    s_streams = p_ref.shape[1]
    acc = None
    for s in range(s_streams):             # static unroll (S = 2)
        f = jnp.maximum(
            jnp.dot(w, p_ref[0, s], preferred_element_type=jnp.float32), 0.0)  # [C, TN]
        r = jnp.sum(f, axis=0, keepdims=True)                                  # [1, TN]
        acc = r if acc is None else acc + r
    o_ref[0] = acc * (1.0 / float(s_streams * c))


def _pick_lane_tile(n_lanes):
    for tn in (512, 256, 128):
        if n_lanes % tn == 0:
            return tn
    return n_lanes


def conv_relu_mean(patches, wmat):
    """patches: [B, S, K, HWp] f32 (spatial last), wmat: [C, K] -> mean map [B, 1, HWp]."""
    B, S, K, HWp = patches.shape
    C = wmat.shape[0]
    TN = _pick_lane_tile(HWp)
    grid = (B, HWp // TN)
    cost = pl.CostEstimate(
        flops=2 * B * S * C * K * HWp,
        transcendentals=0,
        bytes_accessed=int(patches.size) * 4 + int(wmat.size) * 4 + B * HWp * 4,
    )
    return pl.pallas_call(
        _conv_mean_kernel,
        out_shape=jax.ShapeDtypeStruct((B, 1, HWp), jnp.float32),
        grid=grid,
        in_specs=[
            pl.BlockSpec((1, S, K, TN), lambda b, j: (b, 0, 0, j)),
            pl.BlockSpec((C, K), lambda b, j: (0, 0)),
        ],
        out_specs=pl.BlockSpec((1, 1, TN), lambda b, j: (b, 0, j)),
        compiler_params=pltpu.CompilerParams(
            dimension_semantics=("parallel", "parallel"),
            vmem_limit_bytes=VMEM_LIMIT,
        ),
        cost_estimate=cost,
    )(patches, wmat)


# ----------------------------------------------------------------------------
# Pallas kernel 2: numerically stable softmax over the flattened spatial dim
#   x_ref / o_ref : [1, 1, Np]  (one batch row per grid step; padded lanes hold -1e30)
# ----------------------------------------------------------------------------
def _softmax_kernel(x_ref, o_ref):
    x = x_ref[0]                                      # [1, Np]
    m = jnp.max(x, axis=-1, keepdims=True)
    e = jnp.exp(x - m)
    s = jnp.sum(e, axis=-1, keepdims=True)
    o_ref[0] = e / s


def spatial_softmax(x):
    """x: [B, N] f32 -> row-wise softmax [B, N] (lane padding handled internally)."""
    B, N = x.shape
    Np = ((N + 127) // 128) * 128
    xp = jnp.pad(x.astype(jnp.float32), ((0, 0), (0, Np - N)),
                 constant_values=-1e30).reshape(B, 1, Np)
    cost = pl.CostEstimate(flops=4 * B * Np, transcendentals=B * Np,
                           bytes_accessed=2 * B * Np * 4)
    out = pl.pallas_call(
        _softmax_kernel,
        out_shape=jax.ShapeDtypeStruct((B, 1, Np), jnp.float32),
        grid=(B,),
        in_specs=[pl.BlockSpec((1, 1, Np), lambda b: (b, 0, 0))],
        out_specs=pl.BlockSpec((1, 1, Np), lambda b: (b, 0, 0)),
        compiler_params=pltpu.CompilerParams(
            dimension_semantics=("parallel",),
            vmem_limit_bytes=VMEM_LIMIT,
        ),
        cost_estimate=cost,
    )(xp)
    return out[:, 0, :N]


# ----------------------------------------------------------------------------
# Rotation tables (F.affine_grid + F.grid_sample(nearest, align_corners=True))
# affine = [[cos t, sin t, 0], [-sin t, cos t, 0]] -- only 16 discrete angles.
# ----------------------------------------------------------------------------
def _rotation_index_table(thetas, H, W, border):
    ys = jnp.linspace(-1.0, 1.0, H)
    xs = jnp.linspace(-1.0, 1.0, W)
    gy, gx = jnp.meshgrid(ys, xs, indexing="ij")            # [H, W]
    c = jnp.cos(thetas)[:, None, None]
    s = jnp.sin(thetas)[:, None, None]
    sx = c * gx + s * gy                                     # source normalized x
    sy = -s * gx + c * gy                                    # source normalized y
    px = (sx + 1.0) * (W - 1) * 0.5                          # align_corners=True unnorm
    py = (sy + 1.0) * (H - 1) * 0.5
    ix = jnp.round(px).astype(jnp.int32)
    iy = jnp.round(py).astype(jnp.int32)
    if border:
        valid = jnp.ones(ix.shape, jnp.float32)
    else:
        valid = ((ix >= 0) & (ix < W) & (iy >= 0) & (iy < H)).astype(jnp.float32)
    ix = jnp.clip(ix, 0, W - 1)
    iy = jnp.clip(iy, 0, H - 1)
    R = thetas.shape[0]
    return (iy * W + ix).reshape(R, H * W), valid.reshape(R, H * W)


def make_rotation_tables(H, W):
    thetas = jnp.arange(NR_ROTATIONS, dtype=jnp.float32) * (2.0 * math.pi / NR_ROTATIONS)
    idx_fwd, _ = _rotation_index_table(thetas, H, W, border=True)      # forward, border
    idx_bwd, valid_bwd = _rotation_index_table(-thetas, H, W, border=False)  # back, zeros
    return idx_fwd, idx_bwd, valid_bwd


# ----------------------------------------------------------------------------
# GraspHead.forward (is_volatile falsy -> training branch with softmax)
# ----------------------------------------------------------------------------
def grasp_head_forward(depth_heightmap, selected_object, specific_rotation, w_conv, b_conv):
    B, _, H, W = depth_heightmap.shape
    C = w_conv.shape[0]
    HW = H * W

    target_mask = selected_object[:, 0]                       # squeeze(1) -> [B,1,H,W]
    rot_ids = specific_rotation[0].astype(jnp.int32)          # [B]

    idx_fwd, idx_bwd, valid_bwd = make_rotation_tables(H, W)  # [16, HW] constants
    idx_f = idx_fwd[rot_ids]                                   # [B, HW]
    idx_b = idx_bwd[rot_ids]                                   # [B, HW]
    val_b = valid_bwd[rot_ids]                                 # [B, HW]

    # forward-rotate depth + target together (nearest, border) -- one table gather
    x2 = jnp.concatenate([depth_heightmap, target_mask], axis=1).astype(jnp.float32)
    rot = jnp.take_along_axis(
        x2.reshape(B, 2, HW), jnp.broadcast_to(idx_f[:, None], (B, 2, HW)), axis=2
    ).reshape(B, 2, H, W)

    # im2col, lane-dense: [B, 2, K_PAD, HWp].  tap 9 = constant 1 (bias), taps 10.. = 0
    xp = jnp.pad(rot, ((0, 0), (0, 0), (1, 1), (1, 1)))
    taps = [xp[:, :, kh:kh + H, kw:kw + W].reshape(B, 2, HW)
            for kh in range(3) for kw in range(3)]
    taps.append(jnp.ones((B, 2, HW), jnp.float32))
    patches = jnp.stack(taps, axis=2)                                   # [B,2,10,HW]
    HWp = ((HW + 127) // 128) * 128
    patches = jnp.pad(patches, ((0, 0), (0, 0), (0, K_PAD - 10), (0, HWp - HW)))

    wmat = jnp.zeros((C, K_PAD), jnp.float32)
    wmat = wmat.at[:, :9].set(w_conv.reshape(C, 9).astype(jnp.float32))
    wmat = wmat.at[:, 9].set(b_conv.astype(jnp.float32))                # bias column

    # Pallas kernel 1: conv + bias + ReLU + channel mean over both streams
    mean_map = conv_relu_mean(patches, wmat)[:, 0, :]                   # [B, HWp]

    # rotate the 1-channel mean map back (nearest, zeros) -- exact, since the gather
    # and zero-mask are identical for every channel, so mean commutes with it.
    back = jnp.take_along_axis(mean_map, idx_b, axis=1) * val_b         # [B, HW]

    # Pallas kernel 2: softmax over the flattened spatial dim
    probs = spatial_softmax(back)                                        # [B, HW]

    out = probs.reshape(B, 1, H, W).astype(jnp.float32)                  # [B,1,H,W]
    return out[:, None]                                                  # [B,1,1,H,W]


# ----------------------------------------------------------------------------
# Pure-JAX reference mirroring the ORIGINAL op order (rotate -> conv both streams ->
# concat -> rotate back ALL channels -> channel mean -> softmax).  Used only for the
# self-check in __main__.
# ----------------------------------------------------------------------------
def _reference_forward(depth_heightmap, selected_object, specific_rotation, w_conv, b_conv):
    B, _, H, W = depth_heightmap.shape
    C = w_conv.shape[0]
    HW = H * W
    target_mask = selected_object[:, 0]
    rot_ids = specific_rotation[0].astype(jnp.int32)
    idx_fwd, idx_bwd, valid_bwd = make_rotation_tables(H, W)
    idx_f, idx_b, val_b = idx_fwd[rot_ids], idx_bwd[rot_ids], valid_bwd[rot_ids]

    x2 = jnp.concatenate([depth_heightmap, target_mask], axis=1).astype(jnp.float32)
    rot = jnp.take_along_axis(
        x2.reshape(B, 2, HW), jnp.broadcast_to(idx_f[:, None], (B, 2, HW)), axis=2
    ).reshape(B, 2, H, W)
    xp = jnp.pad(rot, ((0, 0), (0, 0), (1, 1), (1, 1)))
    pat = jnp.stack([xp[:, :, kh:kh + H, kw:kw + W].reshape(B, 2, HW)
                     for kh in range(3) for kw in range(3)], axis=2)     # [B,2,9,HW]
    feats = jnp.einsum("ck,bskn->bscn", w_conv.reshape(C, 9).astype(jnp.float32), pat,
                       precision="highest") + b_conv[None, None, :, None]
    feats = jnp.maximum(feats, 0.0).reshape(B, 2 * C, HW)
    back = jnp.take_along_axis(
        feats, jnp.broadcast_to(idx_b[:, None], (B, 2 * C, HW)), axis=2)
    back = back * val_b[:, None, :]
    mean = back.mean(axis=1)
    probs = jax.nn.softmax(mean, axis=-1)
    return probs.reshape(B, 1, H, W)[:, None]


if __name__ == "__main__":
    B, H, W = 2, 16, 16
    key = jax.random.PRNGKey(0)
    k1, k2, k3 = jax.random.split(key, 3)

    depth_heightmap = jax.random.uniform(k1, (B, 1, H, W), dtype=jnp.float32)
    selected_object = (jax.random.uniform(k2, (B, 1, 1, H, W)) > 0.5).astype(jnp.float32)
    specific_rotation = jnp.array([[3, 7]], dtype=jnp.int32)              # [1, B]

    # deterministic synthetic feat_extractor params: 3x3 conv, 1 -> C_FEAT, + ReLU
    w_conv = 0.1 * jax.random.normal(k3, (C_FEAT, 1, 3, 3), dtype=jnp.float32)
    b_conv = 0.01 * jnp.arange(C_FEAT, dtype=jnp.float32)

    fwd = jax.jit(grasp_head_forward)
    out = fwd(depth_heightmap, selected_object, specific_rotation, w_conv, b_conv)
    out = jax.block_until_ready(out)

    assert out.shape == (B, 1, 1, H, W), out.shape
    # softmax rows must sum to 1
    assert bool(jnp.allclose(out.reshape(B, -1).sum(axis=1), 1.0, atol=1e-5))
    # check against the unfused reference (original op order)
    ref = _reference_forward(depth_heightmap, selected_object, specific_rotation,
                             w_conv, b_conv)
    assert bool(jnp.allclose(out, ref, rtol=1e-4, atol=1e-6)), float(
        jnp.max(jnp.abs(out - ref)))
    print("KERNEL_OK")
</pallas_src>

<mosaic_0001>
module attributes {stable_mosaic.version = 11 : i64} {
  func.func @_conv_mean_kernel(%arg0: i32, %arg1: i32, %arg2: memref<1x2x16x256xf32, #tpu.memory_space<vmem>>, %arg3: memref<32x16xf32, #tpu.memory_space<vmem>>, %arg4: memref<1x1x256xf32, #tpu.memory_space<vmem>>) attributes {dimension_semantics = [#tpu.dimension_semantics<parallel>, #tpu.dimension_semantics<parallel>], iteration_bounds = array<i64: 2, 1>, scalar_prefetch = 0 : i64, scratch_operands = 0 : i64, tpu.core_type = #tpu.core_type<tc>, window_params = [{transform_indices = @transform_0, window_bounds = array<i64: 1, 2, 16, 256>}, {pipeline_mode = #tpu.pipeline_mode<synchronous>, transform_indices = @transform_1, window_bounds = array<i64: 32, 16>}, {transform_indices = @transform_2, window_bounds = array<i64: 1, 1, 256>}]} {
    %c0 = arith.constant 0 : index
    %c0_0 = arith.constant 0 : index
    %0 = vector.load %arg3[%c0, %c0_0] : memref<32x16xf32, #tpu.memory_space<vmem>>, vector<32x16xf32>
    %c0_1 = arith.constant 0 : index
    %c0_2 = arith.constant 0 : index
    %c0_3 = arith.constant 0 : index
    %c0_4 = arith.constant 0 : index
    %1 = vector.load %arg2[%c0_1, %c0_2, %c0_3, %c0_4] : memref<1x2x16x256xf32, #tpu.memory_space<vmem>>, vector<1x1x16x256xf32>
    %2 = vector.shape_cast %1 : vector<1x1x16x256xf32> to vector<16x256xf32>
    %cst = arith.constant dense<0.000000e+00> : vector<32x256xf32>
    %3 = tpu.matmul %0, %2, %cst {dimension_numbers = #tpu.dot_dimension_numbers<[1], [0], [0], [1], [0, 0, 1, 1], [], []>} : vector<32x16xf32>, vector<16x256xf32>, vector<32x256xf32> -> vector<32x256xf32>
    %cst_5 = arith.constant 0.000000e+00 : f32
    %4 = vector.broadcast %cst_5 : f32 to vector<32x256xf32>
    %5 = arith.maximumf %3, %4 : vector<32x256xf32>
    %cst_6 = arith.constant dense<0.000000e+00> : vector<256xf32>
    %6 = vector.multi_reduction <add>, %5, %cst_6 [0] : vector<32x256xf32> to vector<256xf32>
    %7 = vector.shape_cast %6 : vector<256xf32> to vector<1x256xf32>
    %c0_7 = arith.constant 0 : index
    %c1 = arith.constant 1 : index
    %c0_8 = arith.constant 0 : index
    %c0_9 = arith.constant 0 : index
    %8 = vector.load %arg2[%c0_7, %c1, %c0_8, %c0_9] : memref<1x2x16x256xf32, #tpu.memory_space<vmem>>, vector<1x1x16x256xf32>
    %9 = vector.shape_cast %8 : vector<1x1x16x256xf32> to vector<16x256xf32>
    %cst_10 = arith.constant dense<0.000000e+00> : vector<32x256xf32>
    %10 = tpu.matmul %0, %9, %cst_10 {dimension_numbers = #tpu.dot_dimension_numbers<[1], [0], [0], [1], [0, 0, 1, 1], [], []>} : vector<32x16xf32>, vector<16x256xf32>, vector<32x256xf32> -> vector<32x256xf32>
    %cst_11 = arith.constant 0.000000e+00 : f32
    %11 = vector.broadcast %cst_11 : f32 to vector<32x256xf32>
    %12 = arith.maximumf %10, %11 : vector<32x256xf32>
    %cst_12 = arith.constant dense<0.000000e+00> : vector<256xf32>
    %13 = vector.multi_reduction <add>, %12, %cst_12 [0] : vector<32x256xf32> to vector<256xf32>
    %14 = vector.shape_cast %13 : vector<256xf32> to vector<1x256xf32>
    %15 = arith.addf %7, %14 : vector<1x256xf32>
    %cst_13 = arith.constant 1.562500e-02 : f32
    %16 = vector.broadcast %cst_13 : f32 to vector<1x256xf32>
    %17 = arith.mulf %15, %16 : vector<1x256xf32>
    %c0_14 = arith.constant 0 : index
    %c0_15 = arith.constant 0 : index
    %c0_16 = arith.constant 0 : index
    %18 = vector.load %arg4[%c0_14, %c0_15, %c0_16] : memref<1x1x256xf32, #tpu.memory_space<vmem>>, vector<1x1x256xf32>
    %19 = vector.shape_cast %18 : vector<1x1x256xf32> to vector<1x256xf32>
    %20 = vector.shape_cast %17 : vector<1x256xf32> to vector<1x1x256xf32>
    tpu.vector_store %arg4[%c0_14, %c0_15, %c0_16], %20 {strides = array<i32>} : memref<1x1x256xf32, #tpu.memory_space<vmem>>, vector<1x1x256xf32>,
    return
  }
  func.func @transform_0(%arg0: i32, %arg1: i32) -> (i32, i32, i32, i32) {
    %c0_i32 = arith.constant 0 : i32
    %c0_i32_0 = arith.constant 0 : i32
    %c0_i32_1 = arith.constant 0 : i32
    return %arg0, %c0_i32, %c0_i32_0, %arg1 : i32, i32, i32, i32
  }
  func.func @transform_1(%arg0: i32, %arg1: i32) -> (i32, i32) {
    %c0_i32 = arith.constant 0 : i32
    %c0_i32_0 = arith.constant 0 : i32
    %c0_i32_1 = arith.constant 0 : i32
    return %c0_i32, %c0_i32_0 : i32, i32
  }
  func.func @transform_2(%arg0: i32, %arg1: i32) -> (i32, i32, i32) {
    %c0_i32 = arith.constant 0 : i32
    %c0_i32_0 = arith.constant 0 : i32
    return %arg0, %c0_i32, %arg1 : i32, i32, i32
  }
}

module attributes {stable_mosaic.version = 11 : i64} {
  func.func @_softmax_kernel(%arg0: i32, %arg1: memref<1x1x256xf32, #tpu.memory_space<vmem>>, %arg2: memref<1x1x256xf32, #tpu.memory_space<vmem>>) attributes {dimension_semantics = [#tpu.dimension_semantics<parallel>], iteration_bounds = array<i64: 2>, scalar_prefetch = 0 : i64, scratch_operands = 0 : i64, tpu.core_type = #tpu.core_type<tc>, window_params = [{transform_indices = @transform_0, window_bounds = array<i64: 1, 1, 256>}, {transform_indices = @transform_1, window_bounds = array<i64: 1, 1, 256>}]} {
    %c0 = arith.constant 0 : index
    %c0_0 = arith.constant 0 : index
    %c0_1 = arith.constant 0 : index
    %0 = vector.load %arg1[%c0, %c0_0, %c0_1] : memref<1x1x256xf32, #tpu.memory_space<vmem>>, vector<1x1x256xf32>
    %1 = vector.shape_cast %0 : vector<1x1x256xf32> to vector<1x256xf32>
    %cst = arith.constant dense<0xFF800000> : vector<1xf32>
    %2 = vector.multi_reduction <maximumf>, %1, %cst [1] : vector<1x256xf32> to vector<1xf32>
    %3 = vector.shape_cast %2 : vector<1xf32> to vector<1x1xf32>
    %4 = vector.broadcast %3 : vector<1x1xf32> to vector<1x256xf32>
    %5 = arith.subf %1, %4 : vector<1x256xf32>
    %6 = math.exp %5 : vector<1x256xf32>
    %cst_2 = arith.constant dense<0.000000e+00> : vector<1xf32>
    %7 = vector.multi_reduction <add>, %6, %cst_2 [1] : vector<1x256xf32> to vector<1xf32>
    %8 = vector.shape_cast %7 : vector<1xf32> to vector<1x1xf32>
    %9 = vector.broadcast %8 : vector<1x1xf32> to vector<1x256xf32>
    %10 = arith.divf %6, %9 : vector<1x256xf32>
    %c0_3 = arith.constant 0 : index
    %c0_4 = arith.constant 0 : index
    %c0_5 = arith.constant 0 : index
    %11 = vector.load %arg2[%c0_3, %c0_4, %c0_5] : memref<1x1x256xf32, #tpu.memory_space<vmem>>, vector<1x1x256xf32>
    %12 = vector.shape_cast %11 : vector<1x1x256xf32> to vector<1x256xf32>
    %13 = vector.shape_cast %10 : vector<1x256xf32> to vector<1x1x256xf32>
    tpu.vector_store %arg2[%c0_3, %c0_4, %c0_5], %13 {strides = array<i32>} : memref<1x1x256xf32, #tpu.memory_space<vmem>>, vector<1x1x256xf32>,
    return
  }
  func.func @transform_0(%arg0: i32) -> (i32, i32, i32) {
    %c0_i32 = arith.constant 0 : i32
    %c0_i32_0 = arith.constant 0 : i32
    %c0_i32_1 = arith.constant 0 : i32
    return %arg0, %c0_i32, %c0_i32_0 : i32, i32, i32
  }
  func.func @transform_1(%arg0: i32) -> (i32, i32, i32) {
    %c0_i32 = arith.constant 0 : i32
    %c0_i32_0 = arith.constant 0 : i32
    %c0_i32_1 = arith.constant 0 : i32
    return %arg0, %c0_i32, %c0_i32_0 : i32, i32, i32
  }
}

</mosaic_0001>

<bundles_post_ra>
// kernel: grasp_head_forward.2
= control target key start
LH: loop header
LB: loop body
LE: loop exit
PB: predicated region body
PF: predicated region fallthrough
CT: control target
= control target key end

     0   :  { %s635_s9 = smov 0   ;;  %s637_s10 = smov 0   ;;  %s692_s0 = inlined_call_operand.vmem [shape: f32[2,2,16,256], index: 0, kind: input, shape index: {}]   ;;  %s693_s1 = inlined_call_operand.vmem [shape: f32[32,16], index: 1, kind: input, shape index: {}]   ;;  %s694_s2 = inlined_call_operand.vmem [shape: f32[2,1,256], index: 2, kind: output, shape index: {}]  }
   0x1   :  { %s639_s11 = smov 0  }
   0x2 LB: > { %s24_s12 = sadd.s32 1, %s612_s10  ;;  %p549_p0 = scmp.ge.s32.totalorder %s616_s11, 1  ;;  %s616_s11 = sphi %s639_s11, %s12_s11   ;;  %s612_s10 = sphi %s637_s10, %s696_s10   ;;  %s608_s9 = sphi %s635_s9, %s695_s9  }
   0x3   : > { %p26_p1 = scmp.ge.s32.totalorder %s24_s12, 2  ;;  %p133_p2 = scmp.lt.s32.totalorder %s616_s11, 3 }
   0x5   : > { %s698_s12 = smov (%p26_p1, %s24_s12), 0  ;;  %p134_p3 = pnand %p549_p0, %p133_p2 }
   0x6   : > { %p163_p4 = scmp.lt.s32.totalorder (!%p134_p3), %s608_s9, 1 }
   0x7   : > { %137 = sbr.rel (%p134_p3) target bundleno = 255 (0xff), region = 28 }
   0xc   : > { %v618_v0 = vmov 0.0   ;;  %s700_s9 = smov (!%p163_p4, %s608_s9), 1  ;;  %v181_v9 = vld [vmem:[%s693_s1] sm:$0xff]  ;;  %vm189_vm0 = vcmask 130048   ;;  %v182_v10 = vld [vmem:[%s693_s1 + $0x8] sm:$0xff]  ;;  %v183_v11 = vld [vmem:[%s693_s1 + $0x10] sm:$0xff] }
   0xd   : > { %266 = vmatprep.mubr.f32.mxu0 %v618_v0  ;;  %386 = vmatprep.mubr.f32.mxu1 %v618_v0  ;;  %s567_s13 = sshll.u32 %s700_s9, 6  ;;  %v184_v12 = vld [vmem:[%s693_s1 + $0x18] sm:$0xff]  ;;  %s552_s25 = sshll.u32 %s700_s9, 1 }
   0xe   : > { %s170_s16 = scalar_lea.vmem %s692_s0, %s567_s13  ;;  %s179_s28 = scalar_lea.vmem %s694_s2, %s552_s25 }
   0xf   : > { %v188_v1 = vld [vmem:[%s170_s16 + $0x18] sm:$0xff]  ;;  %v187_v3 = vld [vmem:[%s170_s16 + $0x10] sm:$0xff]  ;;  %v186_v5 = vld [vmem:[%s170_s16 + $0x8] sm:$0xff] }
  0x10   : > { %v560_v2 = vld [vmem:[%s170_s16 + $0x38] sm:$0xff]  ;;  %230 = vmatprep.subr.mxu0 %v188_v1  ;;  %v559_v4 = vld [vmem:[%s170_s16 + $0x30] sm:$0xff]  ;;  %v558_v6 = vld [vmem:[%s170_s16 + $0x28] sm:$0xff] }
  0x11   : > { %350 = vmatprep.subr.mxu1 %v560_v2  ;;  %231 = vmatpush1.msra.mxu0 %v187_v3  ;;  %v185_v7 = vld [vmem:[%s170_s16] sm:$0xff] }
  0x12   : > { %351 = vmatpush1.msra.mxu1 %v559_v4  ;;  %v557_v8 = vld [vmem:[%s170_s16 + $0x20] sm:$0xff]  ;;  %232 = vmatprep.subr.mxu0 %v186_v5 }
  0x13   : > { %352 = vmatprep.subr.mxu1 %v558_v6  ;;  %233 = vmatpush1.msra.mxu0 %v185_v7  ;;  %v619_v7 = vmov 1966171168  }
  0x14   : > { %353 = vmatpush1.msra.mxu1 %v557_v8  ;;  %553 = vmatmul.mubr.msk.f32.vlgmr.msra.gmra.mxu0 %vm189_vm0, %v181_v9  ;;  %v445_v8 = vunpack.c.l.s4 %v619_v7 }
  0x15   : > { %561 = vmatmul.mubr.msk.f32.vlgmr.msra.gmra.mxu1 %vm189_vm0, %v181_v9  ;;  %272 = vmatprep.mubr.f32.mxu0 %v618_v0  ;;  %v447_v9 = vlaneseq }
  0x16   : > { %392 = vmatprep.mubr.f32.mxu1 %v618_v0 }
  0x17   : > { %vm461_vm1 = vcmp.lt.s32.totalorder %v447_v9, 256 }
  0x18   : > { %554 = vmatmul.mubr.msk.f32.gmra.mxu0 %vm189_vm0, %v182_v10 }
  0x19   : > { %562 = vmatmul.mubr.msk.f32.gmra.mxu1 %vm189_vm0, %v182_v10  ;;  %278 = vmatprep.mubr.f32.mxu0 %v618_v0 }
  0x1a   : > { %398 = vmatprep.mubr.f32.mxu1 %v618_v0 }
  0x1c   : > { %555 = vmatmul.mubr.msk.f32.gmra.mxu0 %vm189_vm0, %v183_v11 }
  0x1d   : > { %563 = vmatmul.mubr.msk.f32.gmra.mxu1 %vm189_vm0, %v183_v11  ;;  %284 = vmatprep.mubr.f32.mxu0 %v618_v0 }
  0x1e   : > { %404 = vmatprep.mubr.f32.mxu1 %v618_v0 }
  0x20   : > { %556 = vmatmul.mubr.msk.f32.gmra.mxu0 %vm189_vm0, %v184_v12 }
  0x21   : > { %564 = vmatmul.mubr.msk.f32.gmra.mxu1 %vm189_vm0, %v184_v12 }
  0xd4   : > { %v268_v13 = vpop.f32.mrf.mxu0 }
  0xd5   : > { %v388_v14 = vpop.f32.mrf.mxu1  ;;  %v291_v27 = vmax.f32 %v268_v13, 0.0 }
  0xd6   : > { %v270_v15 = vpop.f32.mrf.mxu0  ;;  %v411_v28 = vmax.f32 %v388_v14, 0.0 }
  0xd7   : > { %v390_v16 = vpop.f32.mrf.mxu1  ;;  %v292_v31 = vmax.f32 %v270_v15, 0.0 }
  0xd8   : > { %v274_v17 = vpop.f32.mrf.mxu0  ;;  %v412_v32 = vmax.f32 %v390_v16, 0.0 }
  0xd9   : > { %v394_v18 = vpop.f32.mrf.mxu1  ;;  %v293_v21 = vmax.f32 %v274_v17, 0.0 }
  0xda   : > { %v276_v19 = vpop.f32.mrf.mxu0  ;;  %v413_v22 = vmax.f32 %v394_v18, 0.0  ;;  %v446_v18 = vunpack.c.0.s8 %v445_v8 }
  0xdb   : > { %v396_v20 = vpop.f32.mrf.mxu1  ;;  %v294_v23 = vmax.f32 %v276_v19, 0.0  ;;  %v299_v35 = vadd.f32 %v293_v21, %v291_v27 }
  0xdc   : > { %v414_v24 = vmax.f32 %v396_v20, 0.0  ;;  %v280_v25 = vpop.f32.mrf.mxu0  ;;  %v419_v36 = vadd.f32 %v413_v22, %v411_v28  ;;  %v448_v22 = vshrl.u32 %v447_v9, 7 }
  0xdd   : > { %v400_v26 = vpop.f32.mrf.mxu1  ;;  %v295_v29 = vmax.f32 %v280_v25, 0.0  ;;  %v308_v39 = vadd.f32 %v294_v23, %v292_v31 }
  0xde   : > { %v415_v30 = vmax.f32 %v400_v26, 0.0  ;;  %v282_v33 = vpop.f32.mrf.mxu0  ;;  %v428_v40 = vadd.f32 %v414_v24, %v412_v32  ;;  %v449_v26 = vsub.s32 %v446_v18, %v448_v22 }
  0xdf   : > { %v402_v34 = vpop.f32.mrf.mxu1  ;;  %v296_v37 = vmax.f32 %v282_v33, 0.0  ;;  %v300_v43 = vadd.f32 %v299_v35, %v295_v29 }
  0xe0   : > { %v416_v38 = vmax.f32 %v402_v34, 0.0  ;;  %v286_v41 = vpop.f32.mrf.mxu0  ;;  %v420_v44 = vadd.f32 %v419_v36, %v415_v30 }
  0xe1   : > { %v406_v42 = vpop.f32.mrf.mxu1  ;;  %v297_v45 = vmax.f32 %v286_v41, 0.0  ;;  %v309_v47 = vadd.f32 %v308_v39, %v296_v37 }
  0xe2   : > { %v417_v46 = vmax.f32 %v406_v42, 0.0  ;;  %v429_v48 = vadd.f32 %v428_v40, %v416_v38  ;;  %v288_v49 = vpop.f32.mrf.mxu0 }
  0xe3   : > { %v408_v50 = vpop.f32.mrf.mxu1  ;;  %v301_v51 = vadd.f32 %v300_v43, %v297_v45  ;;  %v298_v53 = vmax.f32 %v288_v49, 0.0 }
  0xe4   : > { %v421_v52 = vadd.f32 %v420_v44, %v417_v46  ;;  %v418_v54 = vmax.f32 %v408_v50, 0.0 }
  0xe5   : > { %v302_v55 = vrot.slane %v301_v51, 4  ;;  %v310_v57 = vadd.f32 %v309_v47, %v298_v53 }
  0xe6   : > { %v422_v56 = vrot.slane %v421_v52, 4  ;;  %v430_v58 = vadd.f32 %v429_v48, %v418_v54 }
  0xe7   : > { %v303_v59 = vadd.f32 %v302_v55, %v301_v51  ;;  %v311_v61 = vrot.slane %v310_v57, 4 }
  0xe8   : > { %v423_v60 = vadd.f32 %v422_v56, %v421_v52  ;;  %v431_v62 = vrot.slane %v430_v58, 4 }
  0xe9   : > { %v304_v63 = vrot.slane %v303_v59, 2  ;;  %v312_v1 = vadd.f32 %v311_v61, %v310_v57 }
  0xea   : > { %v424_v0 = vrot.slane %v423_v60, 2  ;;  %v432_v2 = vadd.f32 %v431_v62, %v430_v58 }
  0xeb   : > { %v305_v3 = vadd.f32 %v304_v63, %v303_v59  ;;  %v313_v5 = vrot.slane %v312_v1, 2 }
  0xec   : > { %v425_v4 = vadd.f32 %v424_v0, %v423_v60  ;;  %v433_v6 = vrot.slane %v432_v2, 2 }
  0xed   : > { %v306_v10 = vrot.slane %v305_v3, 1  ;;  %v314_v12 = vadd.f32 %v313_v5, %v312_v1 }
  0xee   : > { %v426_v11 = vrot.slane %v425_v4, 1  ;;  %v434_v13 = vadd.f32 %v433_v6, %v432_v2 }
  0xef   : > { %v307_v14 = vadd.f32 %v306_v10, %v305_v3  ;;  %v315_v16 = vrot.slane %v314_v12, 1 }
  0xf0   : > { %v427_v15 = vadd.f32 %v426_v11, %v425_v4  ;;  %v435_v17 = vrot.slane %v434_v13, 1 }
  0xf1   : > { %v316_v20 = vadd.f32 %v315_v16, %v314_v12 }
  0xf2   : > { %v437_v19 = vadd.f32 %v427_v15, %v307_v14  ;;  %v436_v21 = vadd.f32 %v435_v17, %v434_v13 }
  0xf4   : > { %v438_v23 = vadd.f32 %v436_v21, %v316_v20  ;;  %v439_v24 = vmul.f32 0.015625, %v437_v19 }
  0xf6   : > { %v440_v25 = vmul.f32 0.015625, %v438_v23 }
  0xf8   : > { %v443_v27 = vcombine.low %v439_v24, %v440_v25 }
  0xfa   : > { %v450_v28 = vrot.slane %v443_v27, %v449_v26 }
  0xfc   : > { %v457_v29 = vrot.slane %v450_v28, %v449_v26 }
  0xfe   : > { %463 = vst.msk [vmem:[%s179_s28] sm:$0x3] %vm461_vm1, %v457_v29 }
  0xff PF: > { %s12_s11 = sadd.s32 1, %s616_s11   ;;  %s695_s9 = smov %s612_s10 }
 0x100   : > { %p9_p5 = scmp.ge.s32.totalorder %s12_s11, 4   ;;  %s696_s10 = smov %s698_s12 }
 0x102   :  { %11 = sbr.rel (!%p9_p5) target bundleno = 2 (0x2), region = 59 }

// kernel: grasp_head_forward.3
= control target key start
LH: loop header
LB: loop body
LE: loop exit
PB: predicated region body
PF: predicated region fallthrough
CT: control target
= control target key end

     0   :  { %s260_s6 = smov 0   ;;  %s284_s0 = inlined_call_operand.vmem [shape: f32[2,1,256], index: 0, kind: input, shape index: {}]   ;;  %s285_s1 = inlined_call_operand.vmem [shape: f32[2,1,256], index: 1, kind: output, shape index: {}]  }
   0x1 LB: > { %s221_s7 = sadd.s32 4294967295, %s248_s6   ;;  %p225_p0 = scmp.ge.s32.totalorder %s248_s6, 1  ;;  %s248_s6 = sphi %s260_s6, %s11_s6  }
   0x2   : > { %p86_p1 = scmp.lt.s32.totalorder %s248_s6, 3 }
   0x4   : > { %p87_p2 = pnand %p225_p0, %p86_p1 }
   0x5   : > { %p104_p3 = scmp.lt.s32.totalorder (!%p87_p2), %s221_s7, 1 }
   0x6   : > { %90 = sbr.rel (%p87_p2) target bundleno = 342 (0x156), region = 24 }
   0xb   : > { %v114_v0 = vlaneseq  ;;  %s287_s7 = smov (!%p104_p3, %s221_s7), 1  ;;  %vm124_vm0 = vcmask 1040384  }
   0xc   : > { %s226_s8 = sshll.u32 %s287_s7, 1 }
   0xd   : > { %v115_v1 = vshrl.u32 %v114_v0, 7  ;;  %s107_s11 = scalar_lea.vmem %s284_s0, %s226_s8  ;;  %s111_s14 = scalar_lea.vmem %s285_s1, %s226_s8  ;;  %vm165_vm1 = vcmp.lt.s32.totalorder %v114_v0, 256 }
   0xe   : > { %v112_v4 = vld [vmem:[%s107_s11] sm:$0x3] }
   0xf   : > { %v116_v2 = vsub.s32 0, %v115_v1  ;;  %v120_v3 = vsub.s32 1, %v115_v1 }
  0x11   : > { %v117_v5 = vrot.slane %v112_v4, %v116_v2  ;;  %v121_v6 = vrot.slane %v112_v4, %v120_v3 }
  0x13   : > { %v125_v7 = vsel %vm124_vm0, %v117_v5, -inf  ;;  %v126_v8 = vsel %vm124_vm0, %v121_v6, -inf }
  0x14   : > { %v127_v9 = vmax.f32 %v125_v7, %v126_v8 }
  0x16   : > { %128 = vmax.xlane.f32.xlu0 %v127_v9 }
  0x9f   : > { %v129_v10 = vpop.xlane.xlu0 %128 }
  0xa0   : > { %v134_v11 = vrot.slane %v129_v10, %v116_v2 }
  0xa2   : > { %v136_v12 = vsub.f32 %v112_v4, %v134_v11 }
  0xa4   : > { %v137_v13 = vmul.f32 1.442695, %v136_v12 }
  0xa6   : > { %238 = vpow2.f32 %v137_v13 }
  0xb3   : > { %v239_v14 = vpop.eup %238 }
  0xb4   : > { %v143_v15 = vrot.slane %v239_v14, %v116_v2  ;;  %v147_v16 = vrot.slane %v239_v14, %v120_v3 }
  0xb6   : > { %v150_v17 = vsel %vm124_vm0, %v143_v15, 0.0  ;;  %v151_v18 = vsel %vm124_vm0, %v147_v16, 0.0 }
  0xb7   : > { %v152_v19 = vadd.f32 %v151_v18, %v150_v17 }
  0xb9   : > { %153 = vadd.xlane.f32.xlu0 %v152_v19 }
 0x142   : > { %v154_v20 = vpop.xlane.xlu0 %153 }
 0x143   : > { %v159_v21 = vrot.slane %v154_v20, %v116_v2 }
 0x145   : > { %240 = vrcp.f32 %v159_v21 }
 0x152   : > { %v241_v22 = vpop.eup %240 }
 0x153   : > { %v162_v23 = vmul.f32 %v241_v22, %v239_v14 }
 0x155   : > { %167 = vst.msk [vmem:[%s111_s14] sm:$0x3] %vm165_vm1, %v162_v23 }
 0x156 PF: > { %s11_s6 = sadd.s32 1, %s248_s6  }
 0x157   : > { %p8_p4 = scmp.ge.s32.totalorder %s11_s6, 4  }
 0x159   :  { %10 = sbr.rel (!%p8_p4) target bundleno = 1 (0x1), region = 54 }

// kernel: squeeze.7
= control target key start
LH: loop header
LB: loop body
LE: loop exit
PB: predicated region body
PF: predicated region fallthrough
CT: control target
= control target key end

     0   :  { %s139_s0 = inlined_call_operand.vmem [shape: f32[2,256], index: 0, kind: input, shape index: {}]   ;;  %s140_s1 = inlined_call_operand.hbm [shape: f32[2,1,1,16,16], index: 1, kind: output, shape index: {}]  }
   0x1   :  { %v72_v0 = vld [vmem:[%s139_s0 + $0x2] sm:$0x3]  ;;  %v10_v1 = vld [vmem:[%s139_s0] sm:$0x3] }
   0x2   :  { %9 = vst [vmem:[#allocation2 + $0x8] sm:$0x3] %v72_v0  ;;  %11 = vst [vmem:[#allocation2] sm:$0x3] %v10_v1 }
   0x3   :  { %2 = vsyncpa [#allocation1], 0  ;;  %vm13_vm0 = vcmask 130048   ;;  %s103_s0 = smov 112   ;;  %s104_s10 = smov 80  }
   0x4   :  { %s105_s11 = smov 96   ;;  %s106_s12 = smov 64  }
   0x5   :  { %s107_s13 = smov 48   ;;  %s108_s14 = smov 32  }
   0x6   :  { %s109_s15 = smov 16   ;;  %s110_s16 = smov [#allocation0]  }
   0x7   :  { %s66_s17 = sshll.u32 %s110_s16, 4  ;;  %s67_s17 = int_to_ptr.vmem [resolvable:$true] %s66_s17 }
   0x8   :  { %s81_s18 = scalar_lea.vmem %s67_s17, 512  ;;  %p86_p1 = scmp.lt.s32.totalorder %s67_s17, %s67_s17 }
   0x9   :  { %v20_v2 = vld.sshfl [vmem:[#allocation2] sm:$0xff pattern:$0x99999180]   ;;  %p82_p0 = scmp.ne.s32.totalorder %s67_s17, %s81_s18  ;;  %p87_p2 = scmp.lt.s32.totalorder %s81_s18, %s81_s18 }
   0xa   :  { %v12_v3 = vld [vmem:[#allocation2] sm:$0x3]   ;;  %21 = vrot.lane.b32.xlu0 %v20_v2, %s103_s0  ;;  %33 = vrot.lane.b32.xlu1 %v20_v2, %s104_s10  ;;  %v16_v4 = vld [vmem:[#allocation2 + $0x8] sm:$0x3]  }
   0xb   :  { %14 = vst.msk [vmem:[#allocation0] ss:$16 sm:$0x3] %vm13_vm0, %v12_v3   ;;  %19 = vst.msk [vmem:[#allocation0 + $0x8] ss:$16 sm:$0x3] %vm13_vm0, %v16_v4   ;;  %p88_p3 = por %p87_p2, %p86_p1 }
   0xd   :  { %p89_p4 = pnand %p88_p3, %p82_p0 }
   0xe   :  { %27 = vrot.lane.b32.xlu0 %v20_v2, %s105_s11  ;;  %39 = vrot.lane.b32.xlu1 %v20_v2, %s106_s12 }
  0x12   :  { %45 = vrot.lane.b32.xlu0 %v20_v2, %s107_s13  ;;  %51 = vrot.lane.b32.xlu1 %v20_v2, %s108_s14 }
  0x16   :  { %57 = vrot.lane.b32.xlu0 %v20_v2, %s109_s15 }
  0x7c   :  { %v22_v5 = vpop.permute.xlu0 %21   ;;  %v34_v6 = vpop.permute.xlu1 %33  }
  0x7d   :  { %25 = vst.msk [vmem:[#allocation0 + $0x1] ss:$8 sm:$0xf] %vm13_vm0, %v22_v5   ;;  %37 = vst.msk [vmem:[#allocation0 + $0x3] ss:$8 sm:$0xf] %vm13_vm0, %v34_v6  }
  0x80   :  { %v28_v7 = vpop.permute.xlu0 %27   ;;  %v40_v8 = vpop.permute.xlu1 %39  }
  0x81   :  { %31 = vst.msk [vmem:[#allocation0 + $0x2] ss:$8 sm:$0xf] %vm13_vm0, %v28_v7   ;;  %43 = vst.msk [vmem:[#allocation0 + $0x4] ss:$8 sm:$0xf] %vm13_vm0, %v40_v8  }
  0x84   :  { %v46_v9 = vpop.permute.xlu0 %45   ;;  %v52_v10 = vpop.permute.xlu1 %51  }
  0x85   :  { %49 = vst.msk [vmem:[#allocation0 + $0x5] ss:$8 sm:$0xf] %vm13_vm0, %v46_v9   ;;  %55 = vst.msk [vmem:[#allocation0 + $0x6] ss:$8 sm:$0xf] %vm13_vm0, %v52_v10  }
  0x88   :  { %v58_v11 = vpop.permute.xlu0 %57  }
  0x89   :  { %61 = vst.msk [vmem:[#allocation0 + $0x7] ss:$8 sm:$0xf] %vm13_vm0, %v58_v11  }
  0x8a   :  { %92 = shalt.err (!%p89_p4)
}
  0x8b   :  { %69 = dma.vmem_to_hbm [thread:$0]  %s67_s17, 512, %s140_s1, [#allocation1]  }
  0x8c   :  { %101 = dma.done.wait [#allocation1], 512  }
  0x8d   :  { %102 = vsyncadd [#allocation1], 4294966784 }
  0x8e   :  { %71 = vsyncpa [#allocation1], 1 }

</bundles_post_ra>
